<compile_context>
chip_gen: v7x
topology: tpu7x:2x2x1
jax: 0.10.0
libtpu: 0.0.40
codegen_flags: <defaults>
</compile_context>

<pallas_src>
import math

import numpy as np

import jax
import jax.numpy as jnp
from jax import lax
from jax.experimental import pallas as pl
from jax.experimental.pallas import tpu as pltpu


def _build_positional_encoding(max_seq_len: int, d_model: int) -> np.ndarray:
    """Exact replica of PositionalEncoding.__init__ (note the quirky exponents)."""
    assert d_model % 2 == 0, "PositionalEncoding (as written in PyTorch) requires even d_model"
    pe = np.zeros((max_seq_len, d_model), dtype=np.float32)
    for pos in range(max_seq_len):
        for i in range(0, d_model, 2):
            pe[pos, i] = math.sin(pos / 10000 ** (2 * i / d_model))
            pe[pos, i + 1] = math.cos(pos / 10000 ** (2 * (i + 1) / d_model))
    return pe


def _name_encoder_kernel(ids_ref, table_ref, pe_ref, out_ref):
    # ids_ref   : (tile_rows, 1)  int32  token ids of this row tile (VMEM, pipelined)
    # table_ref : (Vpad, D)       f32    embedding table * sqrt(D), zero-padded (VMEM resident)
    # pe_ref    : (tile_rows, D)  f32    positional encoding pre-tiled over a row tile (VMEM resident)
    # out_ref   : (tile_rows, D)  f32    output row tile
    tile_rows = out_ref.shape[0]
    vpad = table_ref.shape[0]
    # One-hot gather on the MXU: (tile_rows, Vpad) @ (Vpad, D).  Exact, since each
    # output row sums exactly one table row; out-of-range ids hit the zero padding.
    onehot = (lax.broadcasted_iota(jnp.int32, (tile_rows, vpad), 1)
              == ids_ref[...]).astype(jnp.float32)
    out_ref[...] = (jnp.dot(onehot, table_ref[...], preferred_element_type=jnp.float32)
                    + pe_ref[...])


def name_encoder(ids, embed_table, pe):
    """ids: int32 [B, S]; embed_table: f32 [V, D]; pe: f32 [>=S, D] -> f32 [B, S, D]."""
    B, S = ids.shape
    V, D = embed_table.shape
    assert pe.shape[0] >= S and pe.shape[1] == D
    rows = B * S

    # ---- tiling --------------------------------------------------------------
    # tile_rows must be a multiple of 8 (sublane granularity of the BlockSpec) and
    # of S (so the positional encoding repeats exactly inside every tile).
    L = math.lcm(8, S)
    # Target ~1 MiB of logical output per tile; cap at 4096 rows to bound the
    # one-hot / lane-padded VMEM buffers.
    target_rows = max(L, (min(4096, (1 << 20) // (D * 4)) // L) * L)
    # Prefer >= 2 tiles when there is enough work (v7x has 2 TensorCores).
    want_tiles = 2 if rows >= 2 * L else 1
    tile_rows = min(target_rows, max(L, -(-rows // (want_tiles * L)) * L))
    num_tiles = -(-rows // tile_rows)                 # cdiv
    rows_padded = num_tiles * tile_rows

    # ---- operand preparation (tiny, plain XLA) --------------------------------
    ids_flat = ids.reshape(rows).astype(jnp.int32)
    ids_col = jnp.pad(ids_flat, (0, rows_padded - rows)).reshape(rows_padded, 1)

    vpad = max(128, -(-V // 128) * 128)               # pad vocab to MXU lane width
    table_scaled = embed_table.astype(jnp.float32) * jnp.float32(math.sqrt(D))
    table_padded = jnp.zeros((vpad, D), jnp.float32).at[:V, :].set(table_scaled)

    pe_tiled = jnp.tile(pe[:S].astype(jnp.float32), (tile_rows // S, 1))   # (tile_rows, D)

    # VMEM budget: ids + out blocks double-buffered, table + pe resident, one-hot temp.
    lanes = -(-D // 128) * 128                        # lane-padded row width in VMEM
    vmem_est = (2 * tile_rows * 128 * 4               # ids blocks (lane-padded)
                + 2 * tile_rows * lanes * 4           # output blocks
                + vpad * lanes * 4                    # table (single copy)
                + tile_rows * lanes * 4               # pe (single copy)
                + tile_rows * vpad * 4)               # one-hot temporary
    vmem_limit = int(min(64 * 2 ** 20, max(32 * 2 ** 20, 2 * vmem_est)))

    out_flat = pl.pallas_call(
        _name_encoder_kernel,
        out_shape=jax.ShapeDtypeStruct((rows_padded, D), jnp.float32),
        grid_spec=pltpu.PrefetchScalarGridSpec(
            num_scalar_prefetch=0,
            grid=(num_tiles,),
            in_specs=[
                pl.BlockSpec((tile_rows, 1), lambda t: (t, 0)),        # ids (pipelined per tile)
                pl.BlockSpec(memory_space=pltpu.MemorySpace.VMEM),     # table: whole array, resident
                pl.BlockSpec(memory_space=pltpu.MemorySpace.VMEM),     # pe tile: whole array, resident
            ],
            out_specs=pl.BlockSpec((tile_rows, D), lambda t: (t, 0)),
        ),
        compiler_params=pltpu.CompilerParams(
            dimension_semantics=("parallel",),
            vmem_limit_bytes=vmem_limit),
    )(ids_col, table_padded, pe_tiled)

    return out_flat[:rows].reshape(B, S, D)


if __name__ == "__main__":
    # Small config consistent with the module's forward pass.
    B = 2              # batch
    S = 8              # config['transformer']['output_seq_length'] (== max_seq_len of PE)
    D = 32             # config['transformer']['d_model']
    VOCAB = 40         # vocab_size

    key = jax.random.PRNGKey(0)
    k_tab, k_ids = jax.random.split(key)

    # nn.Embedding default init: N(0, 1)
    embed_table = jax.random.normal(k_tab, (VOCAB, D), dtype=jnp.float32)
    token_ids = jax.random.randint(k_ids, (B, S), 0, VOCAB, dtype=jnp.int32)

    pe = jnp.asarray(_build_positional_encoding(S, D))    # [S, D]

    out = jax.block_until_ready(name_encoder(token_ids, embed_table, pe))

    # Pure-JAX reference (embedding lookup * sqrt(D) + pe).
    ref = jnp.take(embed_table, token_ids, axis=0) * jnp.float32(math.sqrt(D)) + pe[None]
    assert out.shape == (B, S, D)
    np.testing.assert_allclose(np.asarray(out), np.asarray(ref), rtol=1e-5, atol=1e-5)

    print("KERNEL_OK")
</pallas_src>

<mosaic_0001>
module attributes {stable_mosaic.version = 11 : i64} {
  func.func @_name_encoder_kernel(%arg0: i32, %arg1: memref<8x1xi32, #tpu.memory_space<vmem>>, %arg2: memref<128x32xf32, #tpu.memory_space<vmem>>, %arg3: memref<8x32xf32, #tpu.memory_space<vmem>>, %arg4: memref<8x32xf32, #tpu.memory_space<vmem>>) attributes {dimension_semantics = [#tpu.dimension_semantics<parallel>], iteration_bounds = array<i64: 2>, scalar_prefetch = 0 : i64, scratch_operands = 0 : i64, tpu.core_type = #tpu.core_type<tc>, window_params = [{transform_indices = @transform_0, window_bounds = array<i64: 8, 1>}, {pipeline_mode = #tpu.pipeline_mode<synchronous>, transform_indices = @transform_1, window_bounds = array<i64: 128, 32>}, {pipeline_mode = #tpu.pipeline_mode<synchronous>, transform_indices = @transform_2, window_bounds = array<i64: 8, 32>}, {transform_indices = @transform_3, window_bounds = array<i64: 8, 32>}]} {
    %0 = tpu.iota {dimensions = array<i32: 1>} : vector<8x128xi32>
    %c0 = arith.constant 0 : index
    %c0_0 = arith.constant 0 : index
    %1 = vector.load %arg1[%c0, %c0_0] : memref<8x1xi32, #tpu.memory_space<vmem>>, vector<8x1xi32>
    %2 = vector.broadcast %1 : vector<8x1xi32> to vector<8x128xi32>
    %3 = arith.cmpi eq, %0, %2 : vector<8x128xi32>
    %4 = arith.extui %3 : vector<8x128xi1> to vector<8x128xi32>
    %5 = arith.sitofp %4 : vector<8x128xi32> to vector<8x128xf32>
    %c0_1 = arith.constant 0 : index
    %c0_2 = arith.constant 0 : index
    %6 = vector.load %arg2[%c0_1, %c0_2] : memref<128x32xf32, #tpu.memory_space<vmem>>, vector<128x32xf32>
    %cst = arith.constant dense<0.000000e+00> : vector<8x32xf32>
    %7 = tpu.matmul %5, %6, %cst {dimension_numbers = #tpu.dot_dimension_numbers<[1], [0], [0], [1], [0, 0, 1, 1], [], []>} : vector<8x128xf32>, vector<128x32xf32>, vector<8x32xf32> -> vector<8x32xf32>
    %c0_3 = arith.constant 0 : index
    %c0_4 = arith.constant 0 : index
    %8 = vector.load %arg3[%c0_3, %c0_4] : memref<8x32xf32, #tpu.memory_space<vmem>>, vector<8x32xf32>
    %9 = arith.addf %7, %8 : vector<8x32xf32>
    %c0_5 = arith.constant 0 : index
    %c0_6 = arith.constant 0 : index
    %10 = vector.load %arg4[%c0_5, %c0_6] : memref<8x32xf32, #tpu.memory_space<vmem>>, vector<8x32xf32>
    tpu.vector_store %arg4[%c0_5, %c0_6], %9 {strides = array<i32>} : memref<8x32xf32, #tpu.memory_space<vmem>>, vector<8x32xf32>,
    return
  }
  func.func @transform_0(%arg0: i32) -> (i32, i32) {
    %c0_i32 = arith.constant 0 : i32
    %c0_i32_0 = arith.constant 0 : i32
    return %arg0, %c0_i32 : i32, i32
  }
  func.func @transform_1(%arg0: i32) -> (i32, i32) {
    %c0_i32 = arith.constant 0 : i32
    %c0_i32_0 = arith.constant 0 : i32
    %c0_i32_1 = arith.constant 0 : i32
    return %c0_i32, %c0_i32_0 : i32, i32
  }
  func.func @transform_2(%arg0: i32) -> (i32, i32) {
    %c0_i32 = arith.constant 0 : i32
    %c0_i32_0 = arith.constant 0 : i32
    %c0_i32_1 = arith.constant 0 : i32
    return %c0_i32, %c0_i32_0 : i32, i32
  }
  func.func @transform_3(%arg0: i32) -> (i32, i32) {
    %c0_i32 = arith.constant 0 : i32
    %c0_i32_0 = arith.constant 0 : i32
    return %arg0, %c0_i32 : i32, i32
  }
}

</mosaic_0001>

<bundles_post_ra>
// kernel: tpu_custom_call.1
= control target key start
LH: loop header
LB: loop body
LE: loop exit
PB: predicated region body
PF: predicated region fallthrough
CT: control target
= control target key end

     0   :  { %8 = vsyncpa [#allocation3], 0  ;;  %s711_s0 = inlined_call_operand.vmem [shape: s32[16,1], index: 0, kind: input, shape index: {}]   ;;  %s712_s1 = inlined_call_operand.vmem [shape: f32[128,32], index: 1, kind: input, shape index: {}]   ;;  %s713_s2 = inlined_call_operand.vmem [shape: f32[8,32], index: 2, kind: input, shape index: {}]   ;;  %s714_s3 = inlined_call_operand.hbm [shape: f32[16,32], index: 3, kind: output, shape index: {}]  }
   0x1   :  { %10 = vsyncpa [#allocation3 + $0x1], 0  ;;  %s560_s12 = smov 0   ;;  %s562_s13 = smov 0  }
   0x2   :  { %s564_s14 = smov 0   ;;  %s566_s15 = smov 0  }
   0x3 LB: > { %s581_s16 = sadd.s32 4294967295, %s532_s15   ;;  %s337_s17 = sadd.s32 4294967294, %s532_s15   ;;  %s532_s15 = sphi %s566_s15, %s720_s15   ;;  %s528_s14 = sphi %s564_s14, %s719_s14   ;;  %s524_s13 = sphi %s562_s13, %s718_s13   ;;  %s520_s12 = sphi %s560_s12, %s717_s12  }
   0x4   : > { %s585_s18 = sadd.s32 1, %s532_s15   ;;  %s91_s19 = sadd.s32 1, %s528_s14 }
   0x5   : > { %s88_s20 = ssub.s32 %s532_s15, %s585_s18  ;;  %p101_p0 = scmp.ne.s32.totalorder %s528_s14, %s524_s13 }
   0x6   : > { %p89_p1 = scmp.eq.s32.totalorder %s88_s20, 0  ;;  %p102_p2 = scmp.eq.s32.totalorder %s581_s16, 1 }
   0x7   : > { %p107_p3 = scmp.ne.s32.totalorder %s524_s13, %s520_s12  ;;  %p108_p4 = scmp.eq.s32.totalorder %s337_s17, 1 }
   0x8   : > { %s596_s21 = scalar_select %p89_p1, %s528_s14, %s91_s19  }
   0x9   : > { %p598_p5 = por %p102_p2, %p101_p0  ;;  %p602_p6 = por %p108_p4, %p107_p3 }
   0xa   : > { %p340_p7 = scmp.ge.s32.totalorder %s532_s15, 1  ;;  %p139_p8 = scmp.lt.s32.totalorder %s532_s15, 3 }
   0xc   : > { %p140_p9 = pnand %p340_p7, %p139_p8 }
   0xd   : > { %p162_p10 = scmp.lt.s32.totalorder (!%p140_p9), %s581_s16, 1  ;;  %v175_v0 = vld [vmem:[%s712_s1] sm:$0xff] (!%p140_p9)  ;;  %v176_v1 = vld [vmem:[%s712_s1 + $0x8] sm:$0xff] (!%p140_p9)  ;;  %v177_v2 = vld [vmem:[%s712_s1 + $0x10] sm:$0xff] (!%p140_p9)  ;;  %v534_v3 = vmov (!%p140_p9), 0   ;;  %v535_v4 = vmov (!%p140_p9), 0.0|0.0   ;;  %v166_v28 = vlaneseq (!%p140_p9) }
   0xe   : > { %143 = sbr.rel (%p140_p9) target bundleno = 383 (0x17f), region = 32  ;;  %469 = vset.pattern.permute.xlu0 (!%p140_p9), %v534_v3  ;;  %401 = vmatprep.subr.bf16.mxu0 (!%p140_p9), %v535_v4  ;;  %v402_v5 = vpack.c.bf16 (!%p140_p9), %v176_v1, %v175_v0  ;;  %v178_v6 = vld [vmem:[%s712_s1 + $0x18] sm:$0xff] (!%p140_p9)  ;;  %v179_v8 = vld [vmem:[%s712_s1 + $0x20] sm:$0xff] (!%p140_p9)  ;;  %v180_v9 = vld [vmem:[%s712_s1 + $0x28] sm:$0xff] (!%p140_p9)  ;;  %vm536_vm0 = vmmov (!%p140_p9), 0   ;;  %v537_v14 = vmov (!%p140_p9), 0.0  }
   0xf   : > { %v405_v7 = vpack.c.bf16 (!%p140_p9), %v178_v6, %v177_v2  ;;  %v408_v11 = vpack.c.bf16 (!%p140_p9), %v180_v9, %v179_v8  ;;  %v181_v12 = vld [vmem:[%s712_s1 + $0x30] sm:$0xff] (!%p140_p9)  ;;  %v182_v13 = vld [vmem:[%s712_s1 + $0x38] sm:$0xff] (!%p140_p9)  ;;  %398 = vmatprep.mubr.msk.f32.mxu0 (!%p140_p9), %vm536_vm0, %v537_v14  ;;  %v183_v16 = vld [vmem:[%s712_s1 + $0x40] sm:$0xff] (!%p140_p9)  ;;  %v167_v29 = vand.u32 (!%p140_p9), 127, %v166_v28  ;;  %v538_v31 = vmov (!%p140_p9), 1.0   ;;  %s159_s25 = sand.u32 (!%p140_p9), 1, %s524_s13  }
  0x10   : > { %403 = vmatpush3.bf16.msra.mxu0 (!%p140_p9), %v402_v5  ;;  %v411_v15 = vpack.c.bf16 (!%p140_p9), %v182_v13, %v181_v12  ;;  %v184_v17 = vld [vmem:[%s712_s1 + $0x48] sm:$0xff] (!%p140_p9)  ;;  %v185_v19 = vld [vmem:[%s712_s1 + $0x50] sm:$0xff] (!%p140_p9)  ;;  %v186_v20 = vld [vmem:[%s712_s1 + $0x58] sm:$0xff] (!%p140_p9)  ;;  %s341_s26 = sshll.u32 (!%p140_p9), %s159_s25, 3  ;;  %s346_s29 = sshll.u32 (!%p140_p9), %s581_s16, 7  ;;  %vm262_vm2 = vcmask (!%p140_p9), 261120  }
  0x11   : > { %404 = vmatprep.subr.bf16.mxu0 (!%p140_p9), %v535_v4  ;;  %v414_v18 = vpack.c.bf16 (!%p140_p9), %v184_v17, %v183_v16  ;;  %v417_v21 = vpack.c.bf16 (!%p140_p9), %v186_v20, %v185_v19  ;;  %v187_v22 = vld [vmem:[%s712_s1 + $0x60] sm:$0xff] (!%p140_p9)  ;;  %v188_v23 = vld [vmem:[%s712_s1 + $0x68] sm:$0xff] (!%p140_p9)  ;;  %v189_v25 = vld [vmem:[%s712_s1 + $0x70] sm:$0xff] (!%p140_p9)  ;;  %s161_s30 = scalar_lea.vmem (!%p140_p9), [#allocation2], %s341_s26  ;;  %s669_s7 = scalar_lea.hbm (!%p140_p9), %s714_s3, %s346_s29 }
  0x12   : > { %v420_v24 = vpack.c.bf16 (!%p140_p9), %v188_v23, %v187_v22  ;;  %v190_v26 = vld [vmem:[%s712_s1 + $0x78] sm:$0xff] (!%p140_p9)  ;;  %v191_v32 = vld [vmem:[%s713_s2] sm:$0xff] (!%p140_p9)  ;;  %s278_s4 = sshll.u32 (!%p140_p9), %s161_s30, 4  ;;  %s265_s8 = scalar_lea.sflag (!%p140_p9), [#allocation3], %s159_s25  ;;  %s671_s4 = int_to_ptr.vmem [resolvable:$true] %s278_s4 }
  0x13   : > { %v423_v27 = vpack.c.bf16 (!%p140_p9), %v190_v26, %v189_v25  ;;  %s470_s9 = scalar_lea.vmem (!%p140_p9), %s671_s4, 128 }
  0x14   : > { %406 = vmatpush3.bf16.msra.mxu0 (!%p140_p9), %v405_v7  ;;  %p471_p11 = scmp.ne.s32.totalorder (!%p140_p9), %s671_s4, %s470_s9 }
  0x15   : > { %s163_s5 = scalar_select %p162_p10, %s581_s16, 1  ;;  %407 = vmatprep.subr.bf16.mxu0 %v535_v4 }
  0x16   : > { %p472_p12 = pnand %p471_p11, %p598_p5  ;;  %s539_s16 = smov [#allocation2]  }
  0x17   : > { %s342_s6 = sshll.u32 %s163_s5, 3  ;;  %s474_s10 = sshll.u32 %s539_s16, 4  ;;  %s475_s10 = int_to_ptr.vmem [resolvable:$false] %s474_s10 }
  0x18   : > { %s165_s19 = scalar_lea.vmem %s711_s0, %s342_s6  ;;  %409 = vmatpush3.bf16.msra.mxu0 %v408_v11  ;;  %p473_p13 = pneg %p472_p12 }
  0x19   : > { %v168_v10 = vld [vmem:[%s165_s19] sm:$0xff]  ;;  %410 = vmatprep.subr.bf16.mxu0 %v535_v4  ;;  %s476_s11 = scalar_lea.vmem %s475_s10, 256  ;;  %p477_p0 = scmp.lt.s32.totalorder %s671_s4, %s475_s10 }
  0x1a   : > { %170 = vperm.xlu0 %469, %v168_v10   ;;  %p478_p1 = scmp.lt.s32.totalorder %s476_s11, %s470_s9 }
  0x1c   : > { %412 = vmatpush3.bf16.msra.mxu0 %v411_v15  ;;  %p479_p2 = por %p478_p1, %p477_p0 }
  0x1d   : > { %413 = vmatprep.subr.bf16.mxu0 %v535_v4 }
  0x1e   : > { %p480_p3 = pnand %p479_p2, %p473_p13 }
  0x20   : > { %415 = vmatpush3.bf16.msra.mxu0 %v414_v18 }
  0x21   : > { %416 = vmatprep.subr.bf16.mxu0 %v535_v4 }
  0x24   : > { %418 = vmatpush3.bf16.msra.mxu0 %v417_v21 }
  0x25   : > { %419 = vmatprep.subr.bf16.mxu0 %v535_v4 }
  0x28   : > { %421 = vmatpush3.bf16.msra.mxu0 %v420_v24 }
  0x29   : > { %422 = vmatprep.subr.bf16.mxu0 %v535_v4 }
  0x2c   : > { %424 = vmatpush3.bf16.msra.mxu0 %v423_v27 }
  0x99   : > { %v171_v30 = vpop.permute.xlu0 %170 }
  0x9a   : > { %vm172_vm1 = vcmp.eq.s32.totalorder %v167_v29, %v171_v30 }
  0x9b   : > { %399 = vmatmul.mubr.msk.f32.vlgmr.msra.gmra.mrb[0].mxu0 %vm172_vm1, %v538_v31 }
 0x16e   : > { %v258_v33 = vpop.f32.mrb[0].mxu0 }
 0x16f   : > { %v259_v34 = vadd.f32 %v258_v33, %v191_v32  ;;  %v400_v35 = vpop.f32.mrb[1].mxu0 }
 0x171   : > { %263 = vst.msk [vmem:[%s161_s30] sm:$0xff] %vm262_vm2, %v259_v34 }
 0x172   : > { %483 = shalt.err (!%p480_p3)
}
 0x173   : > { %s484_s17 = scalar_lea.hbm %s669_s7, 128  ;;  %s488_s24 = scalar_lea.hbm %s714_s3, 256 }
 0x174   : > { %p485_p4 = scmp.ne.s32.totalorder %s669_s7, %s484_s17  ;;  %p489_p9 = scmp.lt.u32.totalorder %s669_s7, %s714_s3 }
 0x175   : > { %p490_p10 = scmp.lt.u32.totalorder %s488_s24, %s484_s17  ;;  %p492_p12 = scmp.lt.u32.totalorder %s484_s17, %s669_s7 }
 0x176   : > { %p486_p7 = pnand %p485_p4, %p598_p5 }
 0x177   : > { %p491_p11 = por %p490_p10, %p489_p9 }
 0x178   : > { %p487_p8 = pneg %p486_p7 }
 0x179   : > { %p493_p13 = por %p492_p12, %p491_p11 }
 0x17b   : > { %p494_p0 = pnand %p493_p13, %p487_p8 }
 0x17d   : > { %497 = shalt.err (!%p494_p0)
}
 0x17e   : > { %425 = dma.vmem_to_hbm [thread:$0]  (%p598_p5), %s671_s4, 128, %s669_s7, %s265_s8  }
 0x17f PF: > { %p431_p1 = scmp.ge.s32.totalorder %s532_s15, 2  ;;  %s290_s27 = sand.u32 1, %s520_s12  }
 0x180   : > { %s291_s28 = scalar_lea.sflag [#allocation3], %s290_s27 }
 0x181   : > { %p428_p2 = pnand %p431_p1, %p602_p6 }
 0x183   : > { %515 = dma.done.wait (!%p428_p2), %s291_s28, 128  }
 0x184   : > { %517 = vsyncadd (!%p428_p2), %s291_s28, 4294967168  ;;  %p13_p3 = scmp.ge.s32.totalorder %s585_s18, 4   ;;  %s717_s12 = smov %s524_s13 }
 0x185   : > { %s718_s13 = smov %s528_s14  ;;  %s719_s14 = smov %s596_s21 }
 0x186   : > { %s720_s15 = smov %s585_s18  ;;  %15 = sbr.rel (!%p13_p3) target bundleno = 3 (0x3), region = 67 }
 0x18d   :  { %296 = vsyncpa [#allocation3], 1 }
 0x18e   :  { %298 = vsyncpa [#allocation3 + $0x1], 1 }

</bundles_post_ra>
